<compile_context>
chip_gen: v7x
topology: tpu7x:2x2x1
jax: 0.10.0
libtpu: 0.0.40
codegen_flags: <defaults>
</compile_context>

<pallas_src>
import functools

import jax
import jax.numpy as jnp
from jax.experimental import pallas as pl
from jax.experimental.pallas import tpu as pltpu


def _round_up(x, m):
    return ((x + m - 1) // m) * m


def _cdiv(a, b):
    return -(-a // b)


def _make_kernel(C, tm, blocks_per_core, M):
    """Kernel over one lane-tile of anchors.

    packed_ref: (9+C, tm) rows = [pred_box(4), gt_box(4), cls(1), logits(C)]
    w_ref     : (C, 1) per-class CE weights (always-resident tiny block)
    out_ref   : (1, 2, 1) per-core reduced (loc_sum, conf_sum)
    acc_ref   : (2, tm) VMEM per-lane accumulator (row 0 = loc, row 1 = conf)
    """

    def kernel(packed_ref, w_ref, out_ref, acc_ref):
        i = pl.program_id(1)

        @pl.when(i == 0)
        def _init():
            acc_ref[...] = jnp.zeros_like(acc_ref)

        # Static (zero-cost) ref views into the packed feature-major block.
        pred_box = packed_ref[0:4, :].astype(jnp.float32)       # (4, tm)
        gt_box = packed_ref[4:8, :].astype(jnp.float32)         # (4, tm)
        cls_f = packed_ref[8:9, :].astype(jnp.float32)          # (1, tm)
        logits = packed_ref[9:9 + C, :].astype(jnp.float32)     # (C, tm)

        # Lanes beyond the true anchor count M are zero padding; mask them out.
        blk = pl.program_id(0) * blocks_per_core + i
        lane = jax.lax.broadcasted_iota(jnp.int32, (1, tm), 1)
        valid = ((blk * tm + lane) < M).astype(jnp.float32)     # (1, tm)

        # ---- localization: SmoothL1(beta=0.5) on positive anchors (cls != 0) ----
        diff = pred_box - gt_box
        ad = jnp.abs(diff)
        # 0.5*d^2/beta = d^2 when beta=0.5 ; else |d| - 0.5*beta = |d| - 0.25
        per_elem = jnp.where(ad < 0.5, ad * ad, ad - 0.25)      # (4, tm)
        pos = (cls_f != 0.0).astype(jnp.float32)                # (1, tm)
        loc_partial = jnp.sum(per_elem, axis=0, keepdims=True) * pos * valid

        # ---- confidence: weighted cross-entropy (sum), class axis on sublanes ----
        cls_i = cls_f.astype(jnp.int32)                         # (1, tm)
        row = jax.lax.broadcasted_iota(jnp.int32, (C, tm), 0)
        onehot = (row == cls_i).astype(jnp.float32)             # (C, tm)
        m = jnp.max(logits, axis=0, keepdims=True)              # (1, tm)
        lse = m + jnp.log(jnp.sum(jnp.exp(logits - m), axis=0, keepdims=True))
        sel = jnp.sum(onehot * logits, axis=0, keepdims=True)   # (1, tm)
        w_anchor = jnp.sum(onehot * w_ref[...], axis=0, keepdims=True)  # (1, tm)
        ce_partial = w_anchor * (lse - sel) * valid

        # One fused accumulate per step into the 2-row VMEM accumulator.
        acc_ref[...] = acc_ref[...] + jnp.concatenate(
            [loc_partial, ce_partial], axis=0)

        @pl.when(i == pl.num_programs(1) - 1)
        def _finalize():
            out_ref[...] = jnp.sum(acc_ref[...], axis=1,
                                   keepdims=True).reshape(1, 2, 1)

    return kernel


def simple_boxes_loss(predictions, ground_truth, weight, alpha=1.0,
                      tile_lanes=8192, num_cores=1):
    """JAX/Pallas equivalent of SimpleBoxesLoss.forward.

    predictions : (B, N, 4 + C) float
    ground_truth: (B, N, 5) float (4 box coords + class index)
    weight      : (C,) per-class CE weight
    """
    # TODO(synk): neg_pos_ratio is stored in the PyTorch __init__ but never used
    # in forward, so it is intentionally not implemented here.
    B, N, D = predictions.shape
    C = D - 4
    R = 9 + C
    M = B * N

    # Single fused packing pass: rows = [pred_box, gt_box, cls, logits], anchors
    # lane-dense on the last axis.  Kept in the (promoted) input dtype so the
    # kernel DMA stays narrow (e.g. bf16) and upcasts on the VPU.
    packed = jnp.concatenate(
        [predictions[..., :4], ground_truth[..., :5], predictions[..., 4:]],
        axis=-1).reshape(M, R).T                                 # (R, M)

    # Tile sizing: lane tiles are multiples of 128; clamp for tiny inputs.
    tile_lanes = max(128, _round_up(int(tile_lanes), 128))
    num_cores = max(1, int(num_cores))
    per_core = _cdiv(M, num_cores)
    tm = min(tile_lanes, _round_up(per_core, 128))
    blocks_per_core = _cdiv(M, num_cores * tm)
    m_pad = num_cores * blocks_per_core * tm

    pad = m_pad - M
    if pad:
        # Zero padding; padded lanes are masked in-kernel via the valid mask.
        packed = jnp.pad(packed, ((0, 0), (0, pad)))

    w_col = weight.reshape(C, 1).astype(jnp.float32)

    def imap(c, i):
        return (0, c * blocks_per_core + i)

    itemsize = jnp.dtype(packed.dtype).itemsize
    block_bytes = R * tm * itemsize
    vmem_limit = int(min(max(4 * block_bytes + (2 << 20), 32 << 20), 64 << 20))

    kernel = _make_kernel(C, tm, blocks_per_core, M)

    out = pl.pallas_call(
        kernel,
        out_shape=jax.ShapeDtypeStruct((num_cores, 2, 1), jnp.float32),
        grid=(num_cores, blocks_per_core),
        in_specs=[
            pl.BlockSpec((R, tm), imap),
            pl.BlockSpec((C, 1), lambda c, i: (0, 0)),
        ],
        out_specs=pl.BlockSpec((1, 2, 1), lambda c, i: (c, 0, 0)),
        scratch_shapes=[pltpu.VMEM((2, tm), jnp.float32)],
        compiler_params=pltpu.CompilerParams(
            dimension_semantics=("parallel", "arbitrary"),
            vmem_limit_bytes=vmem_limit),
    )(packed, w_col)

    loc_loss = jnp.sum(out[:, 0, 0])
    conf_loss = jnp.sum(out[:, 1, 0])
    total = alpha * loc_loss + conf_loss
    return total, alpha * loc_loss, conf_loss


def _reference(predictions, ground_truth, weight, alpha=1.0):
    """Pure-JAX reference mirroring the PyTorch module."""
    cls = ground_truth[..., 4].astype(jnp.int32)
    pos = (cls != 0).astype(jnp.float32)
    diff = predictions[..., :4] - ground_truth[..., :4]
    ad = jnp.abs(diff)
    per = jnp.where(ad < 0.5, ad * ad, ad - 0.25)
    loc = jnp.sum(per * pos[..., None])
    logits = predictions[..., 4:]
    lse = jax.nn.logsumexp(logits, axis=-1)
    sel = jnp.take_along_axis(logits, cls[..., None], axis=-1)[..., 0]
    ce = jnp.sum(weight[cls] * (lse - sel))
    return alpha * loc + ce, alpha * loc, ce


def _make_inputs(key, B, N, C):
    k_pred, k_box, k_cls = jax.random.split(key, 3)
    predictions = jax.random.normal(k_pred, (B, N, 4 + C), dtype=jnp.float32)
    gt_boxes = jax.random.normal(k_box, (B, N, 4), dtype=jnp.float32)
    gt_cls = jax.random.randint(k_cls, (B, N), 0, C).astype(jnp.float32)
    ground_truth = jnp.concatenate([gt_boxes, gt_cls[..., None]], axis=-1)
    return predictions, ground_truth


if __name__ == "__main__":
    alpha = 1.0
    key = jax.random.PRNGKey(0)

    # Case 1: small module-consistent shapes (single tile, padded lanes).
    B, N, C = 2, 16, 8
    class_weight = jnp.linspace(0.5, 1.5, C, dtype=jnp.float32)
    predictions, ground_truth = _make_inputs(key, B, N, C)

    fn = jax.jit(functools.partial(simple_boxes_loss, alpha=alpha))
    loss, loc_loss, conf_loss = fn(predictions, ground_truth, class_weight)
    jax.block_until_ready((loss, loc_loss, conf_loss))

    ref_loss, ref_loc, ref_conf = _reference(predictions, ground_truth, class_weight, alpha)
    assert jnp.allclose(loss, ref_loss, rtol=1e-5, atol=1e-4), (loss, ref_loss)
    assert jnp.allclose(loc_loss, ref_loc, rtol=1e-5, atol=1e-4), (loc_loss, ref_loc)
    assert jnp.allclose(conf_loss, ref_conf, rtol=1e-5, atol=1e-4), (conf_loss, ref_conf)

    # Case 2: multi-block accumulation on one core + remainder padding.
    B2, N2 = 2, 400
    predictions2, ground_truth2 = _make_inputs(jax.random.PRNGKey(1), B2, N2, C)
    fn2 = jax.jit(functools.partial(simple_boxes_loss, alpha=alpha, tile_lanes=128))
    loss2, loc2, conf2 = fn2(predictions2, ground_truth2, class_weight)
    jax.block_until_ready((loss2, loc2, conf2))

    r_loss2, r_loc2, r_conf2 = _reference(predictions2, ground_truth2, class_weight, alpha)
    assert jnp.allclose(loss2, r_loss2, rtol=1e-5, atol=1e-3), (loss2, r_loss2)
    assert jnp.allclose(loc2, r_loc2, rtol=1e-5, atol=1e-3), (loc2, r_loc2)
    assert jnp.allclose(conf2, r_conf2, rtol=1e-5, atol=1e-3), (conf2, r_conf2)

    # Case 3: two-core ("parallel") grid axis + multi-block per core + padding.
    fn3 = jax.jit(functools.partial(simple_boxes_loss, alpha=alpha,
                                    tile_lanes=256, num_cores=2))
    loss3, loc3, conf3 = fn3(predictions2, ground_truth2, class_weight)
    jax.block_until_ready((loss3, loc3, conf3))
    assert jnp.allclose(loss3, r_loss2, rtol=1e-5, atol=1e-3), (loss3, r_loss2)
    assert jnp.allclose(loc3, r_loc2, rtol=1e-5, atol=1e-3), (loc3, r_loc2)
    assert jnp.allclose(conf3, r_conf2, rtol=1e-5, atol=1e-3), (conf3, r_conf2)

    print("KERNEL_OK")
</pallas_src>

<mosaic_0001>
module attributes {stable_mosaic.version = 11 : i64} {
  func.func @kernel(%arg0: i32, %arg1: i32, %arg2: memref<17x128xf32, #tpu.memory_space<vmem>>, %arg3: memref<8x1xf32, #tpu.memory_space<vmem>>, %arg4: memref<1x2x1xf32, #tpu.memory_space<vmem>>, %arg5: memref<2x128xf32, #tpu.memory_space<vmem>>) attributes {dimension_semantics = [#tpu.dimension_semantics<parallel>, #tpu.dimension_semantics<arbitrary>], iteration_bounds = array<i64: 1, 1>, scalar_prefetch = 0 : i64, scratch_operands = 1 : i64, tpu.core_type = #tpu.core_type<tc>, window_params = [{transform_indices = @transform_0, window_bounds = array<i64: 17, 128>}, {pipeline_mode = #tpu.pipeline_mode<synchronous>, transform_indices = @transform_1, window_bounds = array<i64: 8, 1>}, {transform_indices = @transform_2, window_bounds = array<i64: 1, 2, 1>}]} {
    %c0_i32 = arith.constant 0 : i32
    %0 = arith.cmpi eq, %arg1, %c0_i32 : i32
    %1 = arith.extui %0 : i1 to i32
    %c0_i32_0 = arith.constant 0 : i32
    %2 = arith.cmpi ne, %1, %c0_i32_0 : i32
    scf.if %2 {
      %cst_20 = arith.constant 0.000000e+00 : f32
      %66 = vector.broadcast %cst_20 : f32 to vector<2x128xf32>
      %c0_21 = arith.constant 0 : index
      %c0_22 = arith.constant 0 : index
      %67 = vector.load %arg5[%c0_21, %c0_22] : memref<2x128xf32, #tpu.memory_space<vmem>>, vector<2x128xf32>
      tpu.vector_store %arg5[%c0_21, %c0_22], %66 {strides = array<i32>} : memref<2x128xf32, #tpu.memory_space<vmem>>, vector<2x128xf32>,
    } else {
    }
    %c0 = arith.constant 0 : index
    %c0_1 = arith.constant 0 : index
    %3 = vector.load %arg2[%c0, %c0_1] : memref<17x128xf32, #tpu.memory_space<vmem>>, vector<4x128xf32>
    %c4 = arith.constant 4 : index
    %c0_2 = arith.constant 0 : index
    %4 = vector.load %arg2[%c4, %c0_2] : memref<17x128xf32, #tpu.memory_space<vmem>>, vector<4x128xf32>
    %c8 = arith.constant 8 : index
    %c0_3 = arith.constant 0 : index
    %5 = vector.load %arg2[%c8, %c0_3] : memref<17x128xf32, #tpu.memory_space<vmem>>, vector<1x128xf32>
    %c9 = arith.constant 9 : index
    %c0_4 = arith.constant 0 : index
    %6 = vector.load %arg2[%c9, %c0_4] : memref<17x128xf32, #tpu.memory_space<vmem>>, vector<8x128xf32>
    %c1_i32 = arith.constant 1 : i32
    %7 = arith.muli %arg0, %c1_i32 : i32
    %8 = arith.addi %7, %arg1 : i32
    %9 = tpu.iota {dimensions = array<i32: 1>} : vector<1x128xi32>
    %c128_i32 = arith.constant 128 : i32
    %10 = arith.muli %8, %c128_i32 : i32
    %11 = vector.broadcast %10 : i32 to vector<1x128xi32>
    %12 = arith.addi %11, %9 : vector<1x128xi32>
    %c32_i32 = arith.constant 32 : i32
    %13 = vector.broadcast %c32_i32 : i32 to vector<1x128xi32>
    %14 = arith.cmpi slt, %12, %13 : vector<1x128xi32>
    %15 = arith.extui %14 : vector<1x128xi1> to vector<1x128xi32>
    %16 = arith.sitofp %15 : vector<1x128xi32> to vector<1x128xf32>
    %17 = arith.subf %3, %4 : vector<4x128xf32>
    %18 = math.absf %17 : vector<4x128xf32>
    %cst = arith.constant 5.000000e-01 : f32
    %19 = vector.broadcast %cst : f32 to vector<4x128xf32>
    %20 = arith.cmpf olt, %18, %19 : vector<4x128xf32>
    %21 = arith.mulf %18, %18 : vector<4x128xf32>
    %cst_5 = arith.constant 2.500000e-01 : f32
    %22 = vector.broadcast %cst_5 : f32 to vector<4x128xf32>
    %23 = arith.subf %18, %22 : vector<4x128xf32>
    %24 = arith.select %20, %21, %23 : vector<4x128xi1>, vector<4x128xf32>
    %cst_6 = arith.constant 0.000000e+00 : f32
    %25 = vector.broadcast %cst_6 : f32 to vector<1x128xf32>
    %26 = arith.cmpf one, %5, %25 : vector<1x128xf32>
    %27 = arith.extui %26 : vector<1x128xi1> to vector<1x128xi32>
    %28 = arith.sitofp %27 : vector<1x128xi32> to vector<1x128xf32>
    %cst_7 = arith.constant dense<0.000000e+00> : vector<128xf32>
    %29 = vector.multi_reduction <add>, %24, %cst_7 [0] : vector<4x128xf32> to vector<128xf32>
    %30 = vector.shape_cast %29 : vector<128xf32> to vector<1x128xf32>
    %31 = arith.mulf %30, %28 : vector<1x128xf32>
    %32 = arith.mulf %31, %16 : vector<1x128xf32>
    %33 = arith.fptosi %5 : vector<1x128xf32> to vector<1x128xi32>
    %34 = tpu.iota {dimensions = array<i32: 0>} : vector<8x128xi32>
    %35 = vector.broadcast %33 : vector<1x128xi32> to vector<8x128xi32>
    %36 = arith.cmpi eq, %34, %35 : vector<8x128xi32>
    %37 = arith.extui %36 : vector<8x128xi1> to vector<8x128xi32>
    %38 = arith.sitofp %37 : vector<8x128xi32> to vector<8x128xf32>
    %cst_8 = arith.constant dense<0xFF800000> : vector<128xf32>
    %39 = vector.multi_reduction <maximumf>, %6, %cst_8 [0] : vector<8x128xf32> to vector<128xf32>
    %40 = vector.shape_cast %39 : vector<128xf32> to vector<1x128xf32>
    %41 = vector.broadcast %40 : vector<1x128xf32> to vector<8x128xf32>
    %42 = arith.subf %6, %41 : vector<8x128xf32>
    %43 = math.exp %42 : vector<8x128xf32>
    %cst_9 = arith.constant dense<0.000000e+00> : vector<128xf32>
    %44 = vector.multi_reduction <add>, %43, %cst_9 [0] : vector<8x128xf32> to vector<128xf32>
    %45 = vector.shape_cast %44 : vector<128xf32> to vector<1x128xf32>
    %46 = math.log %45 : vector<1x128xf32>
    %47 = arith.addf %40, %46 : vector<1x128xf32>
    %48 = arith.mulf %38, %6 : vector<8x128xf32>
    %cst_10 = arith.constant dense<0.000000e+00> : vector<128xf32>
    %49 = vector.multi_reduction <add>, %48, %cst_10 [0] : vector<8x128xf32> to vector<128xf32>
    %50 = vector.shape_cast %49 : vector<128xf32> to vector<1x128xf32>
    %c0_11 = arith.constant 0 : index
    %c0_12 = arith.constant 0 : index
    %51 = vector.load %arg3[%c0_11, %c0_12] : memref<8x1xf32, #tpu.memory_space<vmem>>, vector<8x1xf32>
    %52 = vector.broadcast %51 : vector<8x1xf32> to vector<8x128xf32>
    %53 = arith.mulf %38, %52 : vector<8x128xf32>
    %cst_13 = arith.constant dense<0.000000e+00> : vector<128xf32>
    %54 = vector.multi_reduction <add>, %53, %cst_13 [0] : vector<8x128xf32> to vector<128xf32>
    %55 = vector.shape_cast %54 : vector<128xf32> to vector<1x128xf32>
    %56 = arith.subf %47, %50 : vector<1x128xf32>
    %57 = arith.mulf %55, %56 : vector<1x128xf32>
    %58 = arith.mulf %57, %16 : vector<1x128xf32>
    %c0_14 = arith.constant 0 : index
    %c0_15 = arith.constant 0 : index
    %59 = vector.load %arg5[%c0_14, %c0_15] : memref<2x128xf32, #tpu.memory_space<vmem>>, vector<2x128xf32>
    %60 = tpu.concatenate %32, %58 in 0 : vector<1x128xf32>, vector<1x128xf32> -> vector<2x128xf32>
    %61 = arith.addf %59, %60 : vector<2x128xf32>
    %c0_16 = arith.constant 0 : index
    %c0_17 = arith.constant 0 : index
    %62 = vector.load %arg5[%c0_16, %c0_17] : memref<2x128xf32, #tpu.memory_space<vmem>>, vector<2x128xf32>
    tpu.vector_store %arg5[%c0_16, %c0_17], %61 {strides = array<i32>} : memref<2x128xf32, #tpu.memory_space<vmem>>, vector<2x128xf32>,
    %c0_i32_18 = arith.constant 0 : i32
    %63 = arith.cmpi eq, %arg1, %c0_i32_18 : i32
    %64 = arith.extui %63 : i1 to i32
    %c0_i32_19 = arith.constant 0 : i32
    %65 = arith.cmpi ne, %64, %c0_i32_19 : i32
    scf.if %65 {
      %c0_20 = arith.constant 0 : index
      %c0_21 = arith.constant 0 : index
      %66 = vector.load %arg5[%c0_20, %c0_21] : memref<2x128xf32, #tpu.memory_space<vmem>>, vector<2x128xf32>
      %cst_22 = arith.constant dense<0.000000e+00> : vector<2xf32>
      %67 = vector.multi_reduction <add>, %66, %cst_22 [1] : vector<2x128xf32> to vector<2xf32>
      %68 = vector.shape_cast %67 : vector<2xf32> to vector<2x1xf32>
      %69 = vector.shape_cast %68 : vector<2x1xf32> to vector<1x2x1xf32>
      %c0_23 = arith.constant 0 : index
      %c0_24 = arith.constant 0 : index
      %c0_25 = arith.constant 0 : index
      %70 = vector.load %arg4[%c0_23, %c0_24, %c0_25] : memref<1x2x1xf32, #tpu.memory_space<vmem>>, vector<1x2x1xf32>
      tpu.vector_store %arg4[%c0_23, %c0_24, %c0_25], %69 {strides = array<i32>} : memref<1x2x1xf32, #tpu.memory_space<vmem>>, vector<1x2x1xf32>,
    } else {
    }
    return
  }
  func.func @transform_0(%arg0: i32, %arg1: i32) -> (i32, i32) {
    %c1_i32 = arith.constant 1 : i32
    %0 = arith.muli %arg0, %c1_i32 : i32
    %1 = arith.addi %0, %arg1 : i32
    %c0_i32 = arith.constant 0 : i32
    %c0_i32_0 = arith.constant 0 : i32
    return %c0_i32, %1 : i32, i32
  }
  func.func @transform_1(%arg0: i32, %arg1: i32) -> (i32, i32) {
    %c0_i32 = arith.constant 0 : i32
    %c0_i32_0 = arith.constant 0 : i32
    %c0_i32_1 = arith.constant 0 : i32
    return %c0_i32, %c0_i32_0 : i32, i32
  }
  func.func @transform_2(%arg0: i32, %arg1: i32) -> (i32, i32, i32) {
    %c0_i32 = arith.constant 0 : i32
    %c0_i32_0 = arith.constant 0 : i32
    %c0_i32_1 = arith.constant 0 : i32
    return %arg0, %c0_i32, %c0_i32_0 : i32, i32, i32
  }
}

</mosaic_0001>

<bundles_post_ra>
// kernel: simple_boxes_loss.1
= control target key start
LH: loop header
LB: loop body
LE: loop exit
PB: predicated region body
PF: predicated region fallthrough
CT: control target
= control target key end

     0   :  { %v154_v0 = vmov 0   ;;  %v155_v2 = vmov 0.0   ;;  %v38_v12 = vlaneseq  ;;  %vm55_vm2 = vcmask 1043456   ;;  %s193_s1 = inlined_call_operand.vmem [shape: f32[8,1], index: 1, kind: input, shape index: {}]   ;;  %s194_s0 = inlined_call_operand.vmem [shape: f32[17,128], index: 0, kind: input, shape index: {}]   ;;  %s195_s2 = inlined_call_operand.vmem [shape: f32[1,2,1], index: 2, kind: output, shape index: {}]  }
   0x1   :  { %149 = vset.pattern.permute.xlu0 %v154_v0  ;;  %v100_v1 = vld [vmem:[%s193_s1] sm:$0xff]  ;;  %32 = vst [vmem:[#allocation2] sm:$0x3] %v155_v2  ;;  %v36_v3 = vld [vmem:[%s194_s0 + $0x9] sm:$0xff]  ;;  %v35_v13 = vld [vmem:[%s194_s0 + $0x8] sm:$0x1] }
   0x2   :  { %103 = vperm.xlu0 %149, %v100_v1   ;;  %v75_v4 = vrot.slane %v36_v3, 4  ;;  %v67_v15 = vshrl.u32 %v38_v12, 7  ;;  %v145_v16 = vtrunc.f32 %v35_v13  ;;  %v33_v17 = vld [vmem:[%s194_s0] sm:$0xf]  ;;  %v34_v18 = vld [vmem:[%s194_s0 + $0x4] sm:$0xf] }
   0x3   :  { %v46_v21 = vsub.f32 %v33_v17, %v34_v18  ;;  %v39_v51 = vand.u32 127, %v38_v12  ;;  %vm52_vm3 = vcmp.ne.f32.partialorder %v35_v13, 0.0  ;;  %vm117_vm5 = vcmask 1040384  }
   0x4   :  { %v76_v5 = vmax.f32 %v36_v3, %v75_v4  ;;  %v70_v20 = vsub.s32 0, %v67_v15  ;;  %v146_v22 = vcvt.f32.s32 %v145_v16  ;;  %v143_v57 = vsel %vm52_vm3, 1.0, %v155_v2 }
   0x5   :  { %v47_v24 = vand.u32 2147483647, %v46_v21  ;;  %vm43_vm4 = vcmp.lt.s32.totalorder %v39_v51, 32  ;;  %vm125_vm6 = vcmask 1041408   ;;  %vm129_vm7 = vcmask 1024  }
   0x6   :  { %v77_v6 = vrot.slane %v76_v5, 2  ;;  %v71_v25 = vrot.slane %v146_v22, %v70_v20  ;;  %v141_v62 = vsel %vm43_vm4, 1.0, %v155_v2 }
   0x7   :  { %v49_v27 = vmul.f32 %v47_v24, %v47_v24  ;;  %v142_v28 = vadd.f32 -0.25, %v47_v24  ;;  %vm48_vm1 = vcmp.lt.f32.partialorder %v47_v24, 0.5 }
   0x8   :  { %v78_v7 = vmax.f32 %v76_v5, %v77_v6  ;;  %vm72_vm0 = vcmp.eq.s32.totalorder %v67_v15, %v71_v25 }
   0x9   :  { %v144_v30 = vsel %vm72_vm0, 1.0, %v155_v2  ;;  %v51_v31 = vsel %vm48_vm1, %v49_v27, %v142_v28 }
   0xa   :  { %v79_v8 = vrot.slane %v78_v7, 1  ;;  %v93_v33 = vmul.f32 %v144_v30, %v36_v3  ;;  %v56_v34 = vsel %vm55_vm2, %v51_v31, 0.0 }
   0xb   :  { %v57_v36 = vrot.slane %v56_v34, 4 }
   0xc   :  { %v80_v9 = vmax.f32 %v78_v7, %v79_v8  ;;  %v94_v37 = vrot.slane %v93_v33, 4 }
   0xd   :  { %v58_v38 = vadd.f32 %v57_v36, %v56_v34 }
   0xe   :  { %v81_v10 = vsub.f32 %v36_v3, %v80_v9  ;;  %v95_v39 = vadd.f32 %v94_v37, %v93_v33  ;;  %v116_v3 = vld [vmem:[#allocation2] sm:$0x3] }
   0xf   :  { %v59_v40 = vrot.slane %v58_v38, 2 }
  0x10   :  { %v82_v11 = vmul.f32 1.442695, %v81_v10  ;;  %v96_v41 = vrot.slane %v95_v39, 2 }
  0x11   :  { %v60_v42 = vadd.f32 %v59_v40, %v58_v38 }
  0x12   :  { %150 = vpow2.f32 %v82_v11  ;;  %v97_v43 = vadd.f32 %v96_v41, %v95_v39 }
  0x13   :  { %v61_v47 = vrot.slane %v60_v42, 1 }
  0x14   :  { %v98_v49 = vrot.slane %v97_v43, 1 }
  0x15   :  { %v62_v53 = vadd.f32 %v61_v47, %v60_v42 }
  0x16   :  { %v99_v55 = vadd.f32 %v98_v49, %v97_v43 }
  0x17   :  { %v63_v59 = vmul.f32 %v143_v57, %v62_v53 }
  0x19   :  { %v64_v0 = vmul.f32 %v141_v62, %v63_v59 }
  0x1c   :  { %v151_v14 = vpop.eup %150 }
  0x1d   :  { %v84_v19 = vrot.slane %v151_v14, 4 }
  0x1f   :  { %v85_v23 = vadd.f32 %v151_v14, %v84_v19 }
  0x21   :  { %v86_v26 = vrot.slane %v85_v23, 2 }
  0x23   :  { %v87_v29 = vadd.f32 %v86_v26, %v85_v23 }
  0x25   :  { %v88_v32 = vrot.slane %v87_v29, 1 }
  0x27   :  { %v89_v35 = vadd.f32 %v88_v32, %v87_v29 }
  0x29   :  { %152 = vlog2.f32 %v89_v35 }
  0x33   :  { %v153_v44 = vpop.eup %152 }
  0x34   :  { %v91_v48 = vmul.f32 0.6931472, %v153_v44 }
  0x36   :  { %v92_v54 = vadd.f32 %v91_v48, %v80_v9 }
  0x38   :  { %v113_v61 = vsub.f32 %v92_v54, %v99_v55 }
  0x81   :  { %v104_v45 = vpop.permute.xlu0 %103 }
  0x82   :  { %v106_v46 = vmul.f32 %v144_v30, %v104_v45 }
  0x84   :  { %v107_v50 = vrot.slane %v106_v46, 4 }
  0x86   :  { %v108_v52 = vadd.f32 %v107_v50, %v106_v46 }
  0x88   :  { %v109_v56 = vrot.slane %v108_v52, 2 }
  0x8a   :  { %v110_v58 = vadd.f32 %v109_v56, %v108_v52 }
  0x8c   :  { %v111_v60 = vrot.slane %v110_v58, 1 }
  0x8e   :  { %v112_v63 = vadd.f32 %v111_v60, %v110_v58 }
  0x90   :  { %v114_v1 = vmul.f32 %v113_v61, %v112_v63 }
  0x92   :  { %v115_v4 = vmul.f32 %v141_v62, %v114_v1 }
  0x94   :  { %v118_v5 = vsel %vm117_vm5, %v64_v0, %v115_v4 }
  0x95   :  { %v119_v6 = vadd.f32 %v118_v5, %v116_v3 }
  0x97   :  { %120 = vst [vmem:[#allocation2] sm:$0x3] %v119_v6 }
  0x9e   :  { %v124_v7 = vld [vmem:[#allocation2] sm:$0x3] }
  0x9f   :  { %v126_v8 = vsel %vm125_vm6, %v124_v7, 0.0 }
  0xa0   :  { %127 = vadd.xlane.f32.xlu0 %v126_v8 }
 0x12d   :  { %v128_v9 = vpop.xlane.xlu0 %127 }
 0x12e   :  { %130 = vst.msk [vmem:[%s195_s2] sm:$0x3] %vm129_vm7, %v128_v9 }

</bundles_post_ra>
